<compile_context>
chip_gen: v6e
topology: v6e:2x2x1
jax: 0.10.0
libtpu: 0.0.40
codegen_flags: <defaults>
</compile_context>

<pallas_src>
import functools

import jax
import jax.numpy as jnp
from jax.experimental import pallas as pl
from jax.experimental.pallas import tpu as pltpu


def _round_up(x, m):
    return ((x + m - 1) // m) * m


def _cdiv(a, b):
    return -(-a // b)


def _sublane_multiple(dtype):
    # Sub-32-bit dtypes pack along sublanes: round row tiles to 8/16/32 for
    # 4/2/1-byte dtypes so the output writeback uses unmasked sublane stores.
    return max(8, 32 // jnp.dtype(dtype).itemsize)


def _vmem_capacity_bytes():
    try:
        return int(pltpu.get_tpu_info().vmem_capacity_bytes)
    except Exception:
        return 128 << 20  # v5e/v6e physical VMEM; v7x has 64 MiB per TC.


def _layernorm_kernel(x_ref, o_ref, *, eps):
    # Fused-slice path: x_ref already holds exactly the first embedding_dim
    # columns of each row tile (column window fused into the input DMA).
    x = x_ref[...].astype(jnp.float32)
    mean = jnp.mean(x, axis=-1, keepdims=True)
    centered = x - mean
    # Two-pass (centered) variance: matches F.layer_norm numerics, avoids the
    # E[x^2]-E[x]^2 cancellation, and is free at the HBM-bound roofline.
    var = jnp.mean(centered * centered, axis=-1, keepdims=True)
    inv = jax.lax.rsqrt(var + eps)
    o_ref[...] = (centered * inv).astype(o_ref.dtype)


def _layernorm_kernel_masked(x_ref, o_ref, *, eps, embedding_dim):
    # Fallback path for embedding_dim that is neither D_in nor a multiple of
    # 128: full-width rows are DMA'd (block last dim == full array dim), lanes
    # >= embedding_dim are masked out of the statistics in-register, and only
    # the first embedding_dim lanes are written back.  No wrapper-side slice
    # => no extra HBM pass over the input tensor.
    x = x_ref[...].astype(jnp.float32)
    lane = jax.lax.broadcasted_iota(jnp.int32, x.shape, dimension=x.ndim - 1)
    valid = lane < embedding_dim
    inv_d = 1.0 / embedding_dim
    mean = jnp.sum(jnp.where(valid, x, 0.0), axis=-1, keepdims=True) * inv_d
    centered = jnp.where(valid, x - mean, 0.0)
    var = jnp.sum(centered * centered, axis=-1, keepdims=True) * inv_d
    inv = jax.lax.rsqrt(var + eps)
    y = centered * inv
    o_ref[...] = y[:, :embedding_dim].astype(o_ref.dtype)


def _pick_row_tile(n_rows, per_row_bytes, dtype, vmem_cap):
    sub = _sublane_multiple(dtype)
    # Budget a fraction of VMEM capacity; ~1-8 MiB tiles already sit at the
    # HBM roofline knee, and bigger tiles only add latency / VMEM pressure.
    tile_budget = min(16 << 20, vmem_cap // 8)
    budget_tile = max(sub, (tile_budget // per_row_bytes) // sub * sub)
    budget_tile = min(budget_tile, 2048)
    # Keep at least ~8 grid steps so double-buffering overlaps DMA with
    # compute, and megacore sharding (v7x) has work for both TCs.
    min_steps = 8
    step_cap = max(sub, _round_up(_cdiv(n_rows, min_steps), sub))
    row_tile = min(budget_tile, step_cap)
    # Best effort: even step count so neither TC idles under 2-way sharding.
    steps = _cdiv(n_rows, row_tile)
    if steps > 1 and steps % 2 == 1:
        alt = max(sub, _round_up(_cdiv(n_rows, steps + 1), sub))
        if _cdiv(n_rows, alt) % 2 == 0:
            row_tile = alt
    return int(row_tile)


def layer_norm_embedding_postprocess(output_embeddings, embedding_dim, eps=1e-6,
                                     row_tile=None):
    """Applies the LayerNormEmbeddingPostprocessor forward pass.

    output_embeddings: array of shape (..., D_in) with D_in >= embedding_dim.
    Returns array of shape (..., embedding_dim), same dtype as input.
    """
    lead_shape = output_embeddings.shape[:-1]
    d_in = output_embeddings.shape[-1]
    assert embedding_dim <= d_in, "embedding_dim must be <= last input dim"

    n_rows = 1
    for s in lead_shape:
        n_rows *= s

    dtype = output_embeddings.dtype
    itemsize = jnp.dtype(dtype).itemsize
    x2d = output_embeddings.reshape(n_rows, d_in)  # contiguous reshape, free

    # Column window [..., :embedding_dim]:
    #  - fused into the input BlockSpec DMA when legal (embedding_dim == d_in
    #    or a multiple of 128): only embedding_dim columns ever leave HBM;
    #  - otherwise handled in-kernel with a lane mask over full-width rows.
    fuse_col_slice = (embedding_dim == d_in) or (embedding_dim % 128 == 0)
    d_in_block = embedding_dim if fuse_col_slice else d_in

    vmem_cap = _vmem_capacity_bytes()
    # Per-row VMEM bytes: double-buffered input + output blocks, plus ~3
    # tile-sized f32 compute temporaries materialized inside the kernel body.
    per_row = (2 * d_in_block + 2 * embedding_dim) * itemsize + 3 * d_in_block * 4

    if row_tile is None:
        row_tile = _pick_row_tile(n_rows, per_row, dtype, vmem_cap)
    else:
        row_tile = _round_up(int(row_tile), _sublane_multiple(dtype))

    footprint = row_tile * per_row
    # Keep headroom for compiler temporaries: never ask for more than half of
    # the physical VMEM of this generation (32 MiB on v7x, 64 MiB on v5e/v6e).
    vmem_limit = int(min(vmem_cap // 2, max(32 << 20, 2 * footprint)))

    grid = (pl.cdiv(n_rows, row_tile),)  # partial last block: OOB writes masked

    if fuse_col_slice:
        kernel = functools.partial(_layernorm_kernel, eps=eps)
    else:
        kernel = functools.partial(_layernorm_kernel_masked, eps=eps,
                                   embedding_dim=embedding_dim)

    cost = pl.CostEstimate(
        flops=7 * n_rows * d_in_block,
        transcendentals=n_rows,
        bytes_accessed=n_rows * (d_in_block + embedding_dim) * itemsize,
    )

    out = pl.pallas_call(
        kernel,
        out_shape=jax.ShapeDtypeStruct((n_rows, embedding_dim), dtype),
        grid_spec=pltpu.PrefetchScalarGridSpec(
            num_scalar_prefetch=0,
            grid=grid,
            # Fused path: block last dim == embedding_dim (multiple of 128 or
            # full dim) -> only those columns are DMA'd per row tile.
            # Masked path: block last dim == d_in (full array dim, legal).
            in_specs=[pl.BlockSpec((row_tile, d_in_block), lambda i: (i, 0))],
            out_specs=pl.BlockSpec((row_tile, embedding_dim), lambda i: (i, 0)),
        ),
        compiler_params=pltpu.CompilerParams(
            dimension_semantics=("parallel",),
            vmem_limit_bytes=vmem_limit,
        ),
        cost_estimate=cost,
    )(x2d)

    return out.reshape(*lead_shape, embedding_dim)


def _reference(x, embedding_dim, eps=1e-6):
    x = x[..., :embedding_dim].astype(jnp.float32)
    mean = jnp.mean(x, axis=-1, keepdims=True)
    var = jnp.mean((x - mean) ** 2, axis=-1, keepdims=True)
    return (x - mean) / jnp.sqrt(var + eps)


if __name__ == "__main__":
    key = jax.random.PRNGKey(0)
    eps = 1e-6
    k1, k2, k3 = jax.random.split(key, 3)

    # Case 1: wide hidden truncated to 32 (embedding_dim not a multiple of
    # 128) -> in-kernel lane-mask path, no wrapper slice.
    batch, seq, hidden_in = 2, 8, 48
    embedding_dim = 32
    x1 = jax.random.normal(k1, (batch, seq, hidden_in), dtype=jnp.float32)
    y1 = jax.block_until_ready(
        layer_norm_embedding_postprocess(x1, embedding_dim, eps=eps))
    y1_ref = _reference(x1, embedding_dim, eps=eps)
    assert y1.shape == (batch, seq, embedding_dim)
    assert jnp.allclose(y1, y1_ref, atol=1e-4, rtol=1e-4), "mismatch (case 1)"

    # Case 2: 128-wide embedding -> fused column-slice BlockSpec path, with a
    # row count (15) that is not a multiple of the row tile (partial block).
    x2 = jax.random.normal(k2, (3, 5, 160), dtype=jnp.float32)
    y2 = jax.block_until_ready(
        layer_norm_embedding_postprocess(x2, 128, eps=eps))
    y2_ref = _reference(x2, 128, eps=eps)
    assert y2.shape == (3, 5, 128)
    assert jnp.allclose(y2, y2_ref, atol=1e-4, rtol=1e-4), "mismatch (case 2)"

    # Case 3: bf16 input, embedding_dim == D_in -> exercises dtype-aware
    # (16-row) sublane rounding and the f32-compute / bf16-store path.
    x3 = jax.random.normal(k3, (4, 8, 128), dtype=jnp.float32).astype(jnp.bfloat16)
    y3 = jax.block_until_ready(
        layer_norm_embedding_postprocess(x3, 128, eps=eps))
    y3_ref = _reference(x3, 128, eps=eps)
    assert y3.shape == (4, 8, 128) and y3.dtype == jnp.bfloat16
    assert jnp.allclose(y3.astype(jnp.float32), y3_ref, atol=3e-2, rtol=3e-2), \
        "mismatch (case 3)"

    print("KERNEL_OK")
</pallas_src>

<mosaic_0001>
module attributes {stable_mosaic.version = 11 : i64} {
  func.func @_layernorm_kernel_masked(%arg0: i32, %arg1: memref<8x48xf32, #tpu.memory_space<vmem>>, %arg2: memref<8x32xf32, #tpu.memory_space<vmem>>) attributes {dimension_semantics = [#tpu.dimension_semantics<parallel>], iteration_bounds = array<i64: 2>, scalar_prefetch = 0 : i64, scratch_operands = 0 : i64, tpu.core_type = #tpu.core_type<tc>, window_params = [{transform_indices = @transform_0, window_bounds = array<i64: 8, 48>}, {transform_indices = @transform_1, window_bounds = array<i64: 8, 32>}]} {
    %c0 = arith.constant 0 : index
    %c0_0 = arith.constant 0 : index
    %0 = vector.load %arg1[%c0, %c0_0] : memref<8x48xf32, #tpu.memory_space<vmem>>, vector<8x48xf32>
    %1 = tpu.iota {dimensions = array<i32: 1>} : vector<8x48xi32>
    %c32_i32 = arith.constant 32 : i32
    %2 = vector.broadcast %c32_i32 : i32 to vector<8x48xi32>
    %3 = arith.cmpi slt, %1, %2 : vector<8x48xi32>
    %cst = arith.constant 0.000000e+00 : f32
    %4 = vector.broadcast %cst : f32 to vector<8x48xf32>
    %5 = arith.select %3, %0, %4 : vector<8x48xi1>, vector<8x48xf32>
    %cst_1 = arith.constant dense<0.000000e+00> : vector<8xf32>
    %6 = vector.multi_reduction <add>, %5, %cst_1 [1] : vector<8x48xf32> to vector<8xf32>
    %7 = vector.shape_cast %6 : vector<8xf32> to vector<8x1xf32>
    %cst_2 = arith.constant 3.125000e-02 : f32
    %8 = vector.broadcast %cst_2 : f32 to vector<8x1xf32>
    %9 = arith.mulf %7, %8 : vector<8x1xf32>
    %10 = vector.broadcast %9 : vector<8x1xf32> to vector<8x48xf32>
    %11 = arith.subf %0, %10 : vector<8x48xf32>
    %cst_3 = arith.constant 0.000000e+00 : f32
    %12 = vector.broadcast %cst_3 : f32 to vector<8x48xf32>
    %13 = arith.select %3, %11, %12 : vector<8x48xi1>, vector<8x48xf32>
    %14 = arith.mulf %13, %13 : vector<8x48xf32>
    %cst_4 = arith.constant dense<0.000000e+00> : vector<8xf32>
    %15 = vector.multi_reduction <add>, %14, %cst_4 [1] : vector<8x48xf32> to vector<8xf32>
    %16 = vector.shape_cast %15 : vector<8xf32> to vector<8x1xf32>
    %cst_5 = arith.constant 3.125000e-02 : f32
    %17 = vector.broadcast %cst_5 : f32 to vector<8x1xf32>
    %18 = arith.mulf %16, %17 : vector<8x1xf32>
    %cst_6 = arith.constant 9.99999997E-7 : f32
    %19 = vector.broadcast %cst_6 : f32 to vector<8x1xf32>
    %20 = arith.addf %18, %19 : vector<8x1xf32>
    %21 = math.rsqrt %20 : vector<8x1xf32>
    %22 = vector.broadcast %21 : vector<8x1xf32> to vector<8x48xf32>
    %23 = arith.mulf %13, %22 : vector<8x48xf32>
    %24 = vector.extract_strided_slice %23 {offsets = [0, 0], sizes = [8, 32], strides = [1, 1]} : vector<8x48xf32> to vector<8x32xf32>
    %c0_7 = arith.constant 0 : index
    %c0_8 = arith.constant 0 : index
    %25 = vector.load %arg2[%c0_7, %c0_8] : memref<8x32xf32, #tpu.memory_space<vmem>>, vector<8x32xf32>
    tpu.vector_store %arg2[%c0_7, %c0_8], %24 {strides = array<i32>} : memref<8x32xf32, #tpu.memory_space<vmem>>, vector<8x32xf32>,
    return
  }
  func.func @transform_0(%arg0: i32) -> (i32, i32) {
    %c0_i32 = arith.constant 0 : i32
    %c0_i32_0 = arith.constant 0 : i32
    return %arg0, %c0_i32 : i32, i32
  }
  func.func @transform_1(%arg0: i32) -> (i32, i32) {
    %c0_i32 = arith.constant 0 : i32
    %c0_i32_0 = arith.constant 0 : i32
    return %arg0, %c0_i32 : i32, i32
  }
}

</mosaic_0001>

<bundles_post_ra>
// kernel: tpu_custom_call.1
= control target key start
LH: loop header
LB: loop body
LE: loop exit
PB: predicated region body
PF: predicated region fallthrough
CT: control target
= control target key end

     0   :  { %6 = vsyncpa [#allocation3], 0  ;;  %s545_s0 = inlined_call_operand.hbm [shape: f32[16,48], index: 0, kind: input, shape index: {}]   ;;  %s546_s1 = inlined_call_operand.hbm [shape: f32[16,32], index: 1, kind: output, shape index: {}]  }
   0x1   :  { %8 = vsyncpa [#allocation3 + $0x1], 0 }
   0x2   :  { %9 = vsyncpa [#allocation4], 0 }
   0x3   :  { %11 = vsyncpa [#allocation4 + $0x1], 0  ;;  %s404_s6 = smov 0   ;;  %s406_s7 = smov 0  }
   0x4   :  { %s408_s8 = smov 0   ;;  %s410_s9 = smov 0  }
   0x5 LB: > { %s425_s10 = sadd.s32 4294967295, %s390_s9   ;;  %s238_s11 = sadd.s32 4294967294, %s390_s9   ;;  %s390_s9 = sphi %s410_s9, %s563_s9   ;;  %s386_s8 = sphi %s408_s8, %s562_s8   ;;  %s382_s7 = sphi %s406_s7, %s561_s7   ;;  %s378_s6 = sphi %s404_s6, %s560_s6  }
   0x6   : > { %s429_s12 = sadd.s32 1, %s390_s9   ;;  %s24_s13 = sadd.s32 1, %s386_s8 }
   0x7   : > { %s21_s14 = ssub.s32 %s390_s9, %s429_s12  ;;  %p31_p0 = scmp.ne.s32.totalorder %s386_s8, %s382_s7 }
   0x8   : > { %p22_p1 = scmp.eq.s32.totalorder %s21_s14, 0  ;;  %p32_p2 = scmp.eq.s32.totalorder %s390_s9, 0 }
   0x9   : > { %p37_p3 = scmp.ne.s32.totalorder %s382_s7, %s378_s6  ;;  %p38_p4 = scmp.eq.s32.totalorder %s425_s10, 0 }
   0xa   : > { %s441_s15 = scalar_select %p22_p1, %s386_s8, %s24_s13  }
   0xb   : > { %p443_p5 = por %p32_p2, %p31_p0  ;;  %p447_p6 = por %p38_p4, %p37_p3 }
   0xc   : > { %p61_p7 = scmp.eq.s32.totalorder %s425_s10, 1  ;;  %p67_p8 = scmp.eq.s32.totalorder %s238_s11, 1 }
   0xd   : > { %s550_s17 = scalar_select %p447_p6, 1, 0 }
   0xe   : > { %p262_p10 = scmp.lt.s32.totalorder %s390_s9, 2  ;;  %p454_p11 = por %p61_p7, %p31_p0 }
   0xf   : > { %p458_p12 = por %p67_p8, %p37_p3  ;;  %s87_s20 = sand.u32 1, %s386_s8  }
  0x10   : > { %s551_s18 = scalar_select %p454_p11, 1, 0 }
  0x11   : > { %s552_s19 = scalar_select %p458_p12, 1, 0 }
  0x12   : > { %s242_s21 = sshll.u32 %s390_s9, 7  ;;  %s241_s22 = sshll.u32 %s87_s20, 3 }
  0x13   : > { %s467_s25 = scalar_lea.hbm %s545_s0, %s242_s21  ;;  %s91_s26 = scalar_lea.vmem [#allocation2], %s241_s22 }
  0x14   : > { %s98_s27 = sshll.u32 %s91_s26, 4  ;;  %p471_p13 = pnand %p262_p10, %p443_p5  ;;  %s475_s27 = int_to_ptr.vmem [resolvable:$true] %s98_s27 }
  0x15   : > { %s88_s29 = scalar_lea.sflag [#allocation3], %s87_s20  ;;  %s298_s30 = scalar_lea.hbm %s467_s25, 128 }
  0x16   : > { %p299_p2 = scmp.ne.s32.totalorder %s467_s25, %s298_s30  ;;  %p300_p3 = pneg %p471_p13 }
  0x17   : > { %s303_s4 = scalar_lea.hbm %s545_s0, 256  ;;  %p304_p5 = scmp.lt.s32.totalorder %s467_s25, %s545_s0 }
  0x18   : > { %p301_p4 = pnand %p300_p3, %p299_p2  ;;  %p305_p8 = scmp.lt.s32.totalorder %s303_s4, %s298_s30 }
  0x1a   : > { %p302_p7 = pneg %p301_p4  ;;  %p306_p10 = por %p305_p8, %p304_p5 }
  0x1c   : > { %p307_p9 = pnand %p306_p10, %p302_p7 }
  0x1e   : > { %310 = shalt.err (!%p307_p9)
}
  0x1f   : > { %s311_s13 = scalar_lea.vmem %s475_s27, 128  ;;  %s392_s14 = smov [#allocation2]  }
  0x20   : > { %p312_p0 = scmp.ne.s32.totalorder %s475_s27, %s311_s13  ;;  %s316_s16 = sshll.u32 %s392_s14, 4  ;;  %s317_s16 = int_to_ptr.vmem [resolvable:$false] %s316_s16 }
  0x21   : > { %s318_s20 = scalar_lea.vmem %s317_s16, 256  ;;  %p319_p4 = scmp.lt.s32.totalorder %s475_s27, %s317_s16 }
  0x22   : > { %p314_p1 = pnand %p312_p0, %p300_p3  ;;  %p320_p12 = scmp.lt.s32.totalorder %s318_s20, %s311_s13 }
  0x24   : > { %p315_p2 = pneg %p314_p1  ;;  %p321_p11 = por %p320_p12, %p319_p4 }
  0x26   : > { %p322_p6 = pnand %p321_p11, %p315_p2 }
  0x28   : > { %325 = shalt.err (!%p322_p6)
}
  0x29   : > { %257 = dma.hbm_to_vmem [thread:$0]  (!%p471_p13), %s467_s25, 128, %s475_s27, %s88_s29  }
  0x2a   : > { %p554_p9 = scmp.lt.s32.totalorder %s390_s9, 3  ;;  %p555_p7 = scmp.ge.s32.totalorder %s390_s9, 1 }
  0x2c   : > { %p104_p0 = pnand %p555_p7, %p554_p9 }
  0x2d   : > { %s502_s21 = sand.u32 (!%p104_p0), 1, %s382_s7   ;;  %p556_p6 = scmp.ne.s32.totalorder (!%p104_p0), %s550_s17, 0 }
  0x2e   : > { %107 = sbr.rel (%p104_p0) target bundleno = 376 (0x178), region = 24  ;;  %s244_s22 = sshll.u32 (!%p104_p0), %s502_s21, 3 }
  0x2f   : > { %s110_s23 = scalar_lea.sflag (!%p104_p0), [#allocation3], %s502_s21  ;;  %s113_s24 = scalar_lea.vmem (!%p104_p0), [#allocation2], %s244_s22 }
  0x33   : > { %369 = dma.done.wait (%p556_p6), %s110_s23, 128  }
  0x34   : > { %371 = vsyncadd (%p556_p6), %s110_s23, 4294967168  ;;  %v133_v0 = vlaneseq  ;;  %vm137_vm1 = vcmask 392192   ;;  %v132_v2 = vld [vmem:[%s113_s24] sm:$0xff]  ;;  %s247_s17 = sshll.u32 %s425_s10, 7  ;;  %s131_s25 = scalar_lea.vmem [#allocation5], %s244_s22  ;;  %vm152_vm2 = vcmask 261120  }
  0x35   : > { %s168_s26 = sshll.u32 %s131_s25, 4  ;;  %s166_s29 = scalar_lea.hbm %s546_s1, %s247_s17  ;;  %s169_s26 = int_to_ptr.vmem [resolvable:$true] %s168_s26 }
  0x36   : > { %v134_v1 = vand.u32 127, %v133_v0  ;;  %s155_s30 = scalar_lea.sflag [#allocation4], %s502_s21  ;;  %s326_s2 = scalar_lea.vmem %s169_s26, 128 }
  0x37   : > { %p327_p11 = scmp.ne.s32.totalorder %s169_s26, %s326_s2  ;;  %p557_p12 = scmp.ne.s32.totalorder %s551_s18, 0 }
  0x38   : > { %vm135_vm0 = vcmp.lt.s32.totalorder %v134_v1, 32  ;;  %s393_s3 = smov [#allocation5]  }
  0x39   : > { %v136_v3 = vsel %vm135_vm0, %v132_v2, 0.0  ;;  %p328_p13 = pnand %p327_p11, %p557_p12  ;;  %s330_s4 = sshll.u32 %s393_s3, 4  ;;  %s331_s4 = int_to_ptr.vmem [resolvable:$false] %s330_s4 }
  0x3a   : > { %v138_v4 = vsel %vm137_vm1, %v136_v3, 0.0  ;;  %s332_s10 = scalar_lea.vmem %s331_s4, 256  ;;  %p333_p3 = scmp.lt.s32.totalorder %s169_s26, %s331_s4 }
  0x3b   : > { %139 = vadd.xlane.f32.xlu0 %v138_v4  ;;  %p329_p1 = pneg %p328_p13  ;;  %p334_p5 = scmp.lt.s32.totalorder %s332_s10, %s326_s2 }
  0x3d   : > { %p335_p8 = por %p334_p5, %p333_p3 }
  0x3f   : > { %p336_p10 = pnand %p335_p8, %p329_p1 }
  0xc4   : > { %v140_v5 = vpop.xlane.xlu0 %139 }
  0xc5   : > { %v141_v6 = vmul.f32 0.03125, %v140_v5 }
  0xc7   : > { %v142_v7 = vsub.f32 %v132_v2, %v141_v6 }
  0xc9   : > { %v143_v8 = vsel %vm135_vm0, %v142_v7, 0.0 }
  0xca   : > { %v144_v9 = vmul.f32 %v143_v8, %v143_v8 }
  0xcc   : > { %v145_v10 = vsel %vm137_vm1, %v144_v9, 0.0 }
  0xcd   : > { %146 = vadd.xlane.f32.xlu0 %v145_v10 }
 0x156   : > { %v147_v11 = vpop.xlane.xlu0 %146 }
 0x157   : > { %v148_v12 = vmul.f32 0.03125, %v147_v11 }
 0x159   : > { %v149_v13 = vadd.f32 1e-06, %v148_v12 }
 0x15b   : > { %296 = vrsqrt.f32 %v149_v13 }
 0x168   : > { %v297_v14 = vpop.eup %296 }
 0x169   : > { %v151_v15 = vmul.f32 %v297_v14, %v143_v8 }
 0x16b   : > { %153 = vst.msk [vmem:[%s131_s25] sm:$0xff] %vm152_vm2, %v151_v15 }
 0x16c   : > { %339 = shalt.err (!%p336_p10)
}
 0x16d   : > { %s340_s5 = scalar_lea.hbm %s166_s29, 128  ;;  %s344_s14 = scalar_lea.hbm %s546_s1, 256 }
 0x16e   : > { %p341_p2 = scmp.ne.s32.totalorder %s166_s29, %s340_s5  ;;  %p345_p7 = scmp.lt.s32.totalorder %s166_s29, %s546_s1 }
 0x16f   : > { %p346_p0 = scmp.lt.s32.totalorder %s344_s14, %s340_s5 }
 0x170   : > { %p342_p4 = pnand %p341_p2, %p557_p12 }
 0x171   : > { %p347_p6 = por %p346_p0, %p345_p7 }
 0x172   : > { %p343_p9 = pneg %p342_p4 }
 0x174   : > { %p348_p11 = pnand %p347_p6, %p343_p9 }
 0x176   : > { %351 = shalt.err (!%p348_p11)
}
 0x177   : > { %252 = dma.vmem_to_hbm [thread:$0]  (%p557_p12), %s169_s26, 128, %s166_s29, %s155_s30  }
 0x178 PF: > { %s180_s21 = sand.u32 1, %s378_s6   ;;  %p558_p13 = scmp.ne.s32.totalorder %s552_s19, 0 }
 0x179   : > { %p559_p1 = scmp.ge.s32.totalorder %s390_s9, 2  ;;  %s181_s22 = scalar_lea.sflag [#allocation4], %s180_s21 }
 0x17b   : > { %p259_p3 = pnand %p559_p1, %p558_p13 }
 0x17d   : > { %p260_p5 = pneg %p259_p3 }
 0x17f   : > { %373 = dma.done.wait (%p260_p5), %s181_s22, 128  }
 0x180   : > { %375 = vsyncadd (%p260_p5), %s181_s22, 4294967168  ;;  %p14_p8 = scmp.ge.s32.totalorder %s429_s12, 4   ;;  %s560_s6 = smov %s382_s7 }
 0x181   : > { %s561_s7 = smov %s386_s8  ;;  %s562_s8 = smov %s441_s15 }
 0x182   : > { %s563_s9 = smov %s429_s12  ;;  %16 = sbr.rel (!%p14_p8) target bundleno = 5 (0x5), region = 69 }
 0x187   :  { %186 = vsyncpa [#allocation3], 1 }
 0x188   :  { %188 = vsyncpa [#allocation3 + $0x1], 1 }
 0x189   :  { %189 = vsyncpa [#allocation4], 1 }
 0x18a   :  { %191 = vsyncpa [#allocation4 + $0x1], 1 }

</bundles_post_ra>
